<compile_context>
chip_gen: v6e
topology: v6e:2x2x1
jax: 0.10.0
libtpu: 0.0.40
codegen_flags: <defaults>
</compile_context>

<pallas_src>
import jax
import jax.numpy as jnp
from jax import lax
from jax.experimental import pallas as pl
from jax.experimental.pallas import tpu as pltpu


def _cdiv(a, b):
    return -(-a // b)


def _round_up(a, b):
    return _cdiv(a, b) * b


def _patch_embed_kernel(p_ref, w_ref, b_ref, o_ref):
    # p_ref: (tm, K)  flattened patch tile (io_dtype)
    # w_ref: (K, N)   projection weight, pre-transposed (io_dtype, resident)
    # b_ref: (1, N)   projection bias (f32, resident)
    # o_ref: (tm, N)  embedded patches (out_dtype)
    acc = jnp.dot(
        p_ref[...],
        w_ref[...],
        preferred_element_type=jnp.float32,
        precision=lax.Precision.HIGHEST,
    )
    o_ref[...] = (acc + b_ref[...]).astype(o_ref.dtype)


def patch_embed(x, weight, bias, patch_size=4, *, tile_m=2048,
                io_dtype=jnp.bfloat16, out_dtype=jnp.bfloat16):
    """PatchEmbed.forward as a Pallas GEMM kernel.

    x:      (B, in_c, H, W) float32
    weight: (embed_dim, in_c, p, p)  -- nn.Conv2d weight
    bias:   (embed_dim,)             -- nn.Conv2d bias
    Returns (tokens, Hp, Wp) with tokens: (B, Hp*Wp, embed_dim) in out_dtype.
    """
    B, C, H, W = x.shape
    p = patch_size

    # Pad bottom/right so H, W are multiples of the patch size (F.pad in torch).
    pad_h = (-H) % p
    pad_w = (-W) % p
    if pad_h or pad_w:
        x = jnp.pad(x, ((0, 0), (0, 0), (0, pad_h), (0, pad_w)))
    Hp, Wp = (H + pad_h) // p, (W + pad_w) // p

    N = weight.shape[0]          # embed_dim
    K = C * p * p                # patch vector length
    M = B * Hp * Wp

    # Cast before the extraction transpose so the only big data-movement op on
    # the activations runs at io_dtype width (halves its traffic for bf16).
    xc = x.astype(io_dtype)

    # Patch extraction: (B,C,Hp,p,Wp,p) -> (B,Hp,Wp,C,p,p) -> (M, K).
    # Flatten order (c, kh, kw) matches Conv2d's OIHW weight flatten below.
    patches = (xc.reshape(B, C, Hp, p, Wp, p)
                 .transpose(0, 2, 4, 1, 3, 5)
                 .reshape(M, K))
    w2d = weight.reshape(N, K).T.astype(io_dtype)     # (K, N)
    b2d = bias.reshape(1, N).astype(jnp.float32)      # (1, N), f32 bias add

    # Tile size: as large as allowed, but keep >= 2 grid steps so both v7x
    # TensorCores get work (near-zero effect on single-TC v5e/v6e).
    tm = min(tile_m, M, max(_cdiv(M, 2), 16))
    tm = _round_up(tm, 16)                            # bf16 sublane packing
    M_pad = _round_up(M, tm)
    if M_pad != M:
        # Zero rows -> bias-only garbage rows, sliced off after the call.
        patches = jnp.pad(patches, ((0, M_pad - M), (0, 0)))
    grid = (M_pad // tm,)

    in_bytes = jnp.dtype(io_dtype).itemsize
    out_bytes = jnp.dtype(out_dtype).itemsize
    cost = pl.CostEstimate(
        flops=2 * M_pad * K * N,
        transcendentals=0,
        bytes_accessed=in_bytes * (M_pad * K + K * N) + 4 * N
        + out_bytes * M_pad * N,
    )

    out = pl.pallas_call(
        _patch_embed_kernel,
        out_shape=jax.ShapeDtypeStruct((M_pad, N), out_dtype),
        grid=grid,
        in_specs=[
            pl.BlockSpec((tm, K), lambda i: (i, 0)),   # streamed patch tile
            pl.BlockSpec((K, N), lambda i: (0, 0)),    # resident weight
            pl.BlockSpec((1, N), lambda i: (0, 0)),    # resident bias
        ],
        out_specs=pl.BlockSpec((tm, N), lambda i: (i, 0)),
        compiler_params=pltpu.CompilerParams(
            dimension_semantics=("parallel",),          # shard M across TCs
            allow_input_fusion=[True, False, False],    # fold patch transpose
            vmem_limit_bytes=32 * 1024 * 1024,
        ),
        cost_estimate=cost,
    )(patches, w2d, b2d)

    tokens = out[:M].reshape(B, Hp * Wp, N)             # flatten(2).transpose(1,2)
    return tokens, Hp, Wp


def patch_embed_ref(x, weight, bias, patch_size=4):
    """Pure-JAX reference mirroring the PyTorch module (different code path)."""
    B, C, H, W = x.shape
    p = patch_size
    pad_h = (-H) % p
    pad_w = (-W) % p
    if pad_h or pad_w:
        x = jnp.pad(x, ((0, 0), (0, 0), (0, pad_h), (0, pad_w)))
    y = lax.conv_general_dilated(
        x, weight, window_strides=(p, p), padding="VALID",
        dimension_numbers=("NCHW", "OIHW", "NCHW"),
        precision=lax.Precision.HIGHEST)
    y = y + bias[None, :, None, None]
    _, N, Hp, Wp = y.shape
    y = y.reshape(B, N, Hp * Wp).transpose(0, 2, 1)
    return y, Hp, Wp


if __name__ == "__main__":
    # Module defaults: patch_size=4, in_c=3, embed_dim=96, norm_layer=None.
    # H = W = 30 is NOT divisible by 4, so the padding path is exercised too.
    B, C, H, W = 2, 3, 30, 30
    patch_size, embed_dim = 4, 96

    key = jax.random.PRNGKey(0)
    kx, kw, kb = jax.random.split(key, 3)

    x = jax.random.normal(kx, (B, C, H, W), dtype=jnp.float32)
    fan_in = C * patch_size * patch_size
    weight = jax.random.normal(
        kw, (embed_dim, C, patch_size, patch_size), dtype=jnp.float32
    ) / jnp.sqrt(fan_in)
    bias = jax.random.normal(kb, (embed_dim,), dtype=jnp.float32) * 0.02

    ref, Hp_r, Wp_r = patch_embed_ref(x, weight, bias, patch_size=patch_size)

    # 1) Module-exact numerics path: f32 streaming, f32 output.
    tok32, Hp, Wp = patch_embed(x, weight, bias, patch_size=patch_size,
                                io_dtype=jnp.float32, out_dtype=jnp.float32)
    tok32 = jax.block_until_ready(tok32)
    assert (Hp, Wp) == (Hp_r, Wp_r), (Hp, Wp, Hp_r, Wp_r)
    assert tok32.shape == (B, Hp * Wp, embed_dim), tok32.shape
    err32 = jnp.max(jnp.abs(tok32 - ref))
    assert jnp.allclose(tok32, ref, atol=1e-3, rtol=1e-3), f"f32 max err {err32}"

    # 2) Default performance path: bf16 streaming + bf16 output, f32 accumulate.
    tok16, Hp2, Wp2 = patch_embed(x, weight, bias, patch_size=patch_size)
    tok16 = jax.block_until_ready(tok16)
    assert (Hp2, Wp2) == (Hp_r, Wp_r), (Hp2, Wp2, Hp_r, Wp_r)
    assert tok16.dtype == jnp.bfloat16, tok16.dtype
    assert tok16.shape == (B, Hp * Wp, embed_dim), tok16.shape
    err16 = jnp.max(jnp.abs(tok16.astype(jnp.float32) - ref))
    assert jnp.allclose(tok16.astype(jnp.float32), ref, atol=4e-2, rtol=4e-2), \
        f"bf16 max err {err16}"

    print("KERNEL_OK")
</pallas_src>

<mosaic_0001>
module attributes {stable_mosaic.version = 11 : i64} {
  func.func @_patch_embed_kernel(%arg0: i32, %arg1: memref<64x48xf32, #tpu.memory_space<vmem>>, %arg2: memref<48x96xf32, #tpu.memory_space<vmem>>, %arg3: memref<1x96xf32, #tpu.memory_space<vmem>>, %arg4: memref<64x96xf32, #tpu.memory_space<vmem>>) attributes {dimension_semantics = [#tpu.dimension_semantics<parallel>], iteration_bounds = array<i64: 2>, scalar_prefetch = 0 : i64, scratch_operands = 0 : i64, tpu.core_type = #tpu.core_type<tc>, window_params = [{transform_indices = @transform_0, window_bounds = array<i64: 64, 48>}, {pipeline_mode = #tpu.pipeline_mode<synchronous>, transform_indices = @transform_1, window_bounds = array<i64: 48, 96>}, {pipeline_mode = #tpu.pipeline_mode<synchronous>, transform_indices = @transform_2, window_bounds = array<i64: 1, 96>}, {transform_indices = @transform_3, window_bounds = array<i64: 64, 96>}]} {
    %c0 = arith.constant 0 : index
    %c0_0 = arith.constant 0 : index
    %0 = vector.load %arg1[%c0, %c0_0] : memref<64x48xf32, #tpu.memory_space<vmem>>, vector<64x48xf32>
    %c0_1 = arith.constant 0 : index
    %c0_2 = arith.constant 0 : index
    %1 = vector.load %arg2[%c0_1, %c0_2] : memref<48x96xf32, #tpu.memory_space<vmem>>, vector<48x96xf32>
    %cst = arith.constant dense<0.000000e+00> : vector<64x96xf32>
    %2 = tpu.matmul %0, %1, %cst {dimension_numbers = #tpu.dot_dimension_numbers<[1], [0], [0], [1], [0, 0, 1, 1], [], []>, precision = #tpu.contract_precision<fp32>} : vector<64x48xf32>, vector<48x96xf32>, vector<64x96xf32> -> vector<64x96xf32>
    %c0_3 = arith.constant 0 : index
    %c0_4 = arith.constant 0 : index
    %3 = vector.load %arg3[%c0_3, %c0_4] : memref<1x96xf32, #tpu.memory_space<vmem>>, vector<1x96xf32>
    %4 = vector.broadcast %3 : vector<1x96xf32> to vector<64x96xf32>
    %5 = arith.addf %2, %4 : vector<64x96xf32>
    %c0_5 = arith.constant 0 : index
    %c0_6 = arith.constant 0 : index
    %6 = vector.load %arg4[%c0_5, %c0_6] : memref<64x96xf32, #tpu.memory_space<vmem>>, vector<64x96xf32>
    tpu.vector_store %arg4[%c0_5, %c0_6], %5 {strides = array<i32>} : memref<64x96xf32, #tpu.memory_space<vmem>>, vector<64x96xf32>,
    return
  }
  func.func @transform_0(%arg0: i32) -> (i32, i32) {
    %c0_i32 = arith.constant 0 : i32
    %c0_i32_0 = arith.constant 0 : i32
    return %arg0, %c0_i32 : i32, i32
  }
  func.func @transform_1(%arg0: i32) -> (i32, i32) {
    %c0_i32 = arith.constant 0 : i32
    %c0_i32_0 = arith.constant 0 : i32
    %c0_i32_1 = arith.constant 0 : i32
    return %c0_i32, %c0_i32_0 : i32, i32
  }
  func.func @transform_2(%arg0: i32) -> (i32, i32) {
    %c0_i32 = arith.constant 0 : i32
    %c0_i32_0 = arith.constant 0 : i32
    %c0_i32_1 = arith.constant 0 : i32
    return %c0_i32, %c0_i32_0 : i32, i32
  }
  func.func @transform_3(%arg0: i32) -> (i32, i32) {
    %c0_i32 = arith.constant 0 : i32
    %c0_i32_0 = arith.constant 0 : i32
    return %arg0, %c0_i32 : i32, i32
  }
}

</mosaic_0001>

<bundles_post_ra>
// kernel: tpu_custom_call.1
= control target key start
LH: loop header
LB: loop body
LE: loop exit
PB: predicated region body
PF: predicated region fallthrough
CT: control target
= control target key end

     0   :  { %s1373_s12 = smov 0   ;;  %s1694_s0 = inlined_call_operand.vmem [shape: f32[128,48], index: 0, kind: input, shape index: {}]   ;;  %s1695_s1 = inlined_call_operand.vmem [shape: f32[48,96], index: 1, kind: input, shape index: {}]   ;;  %s1696_s2 = inlined_call_operand.vmem [shape: f32[1,96], index: 2, kind: input, shape index: {}]   ;;  %s1697_s3 = inlined_call_operand.vmem [shape: f32[128,96], index: 3, kind: output, shape index: {}]  }
   0x1 LB: > { %s1097_s13 = sadd.s32 4294967295, %s1351_s12   ;;  %p1101_p0 = scmp.ge.s32.totalorder %s1351_s12, 1  ;;  %s1351_s12 = sphi %s1373_s12, %s13_s12  }
   0x2   : > { %p138_p1 = scmp.lt.s32.totalorder %s1351_s12, 3 }
   0x4   : > { %p139_p2 = pnand %p1101_p0, %p138_p1 }
   0x5   : > { %s1102_s20 = sshll.u32 (!%p139_p2), %s1097_s13, 3 }
   0x6   : > { %142 = sbr.rel (%p139_p2) target bundleno = 283 (0x11b), region = 32  ;;  %p163_p3 = scmp.lt.s32.totalorder (!%p139_p2), %s1102_s20, 15 }
   0xb   : > { %v187_v0 = vld [vmem:[%s1695_s1 + $0x28] sm:$0xff]  ;;  %v186_v1 = vld [vmem:[%s1695_s1 + $0x20] sm:$0xff]  ;;  %v185_v2 = vld [vmem:[%s1695_s1 + $0x18] sm:$0xff]  ;;  %s1699_s20 = smov (!%p163_p3, %s1102_s20), 15  ;;  %vm195_vm0 = vcmask 392192   ;;  %vm1032_vm1 = vcmask 785408  }
   0xc   : > { %v1390_v3 = vand.u32 4294901760, %v187_v0  ;;  %v1392_v4 = vand.u32 4294901760, %v186_v1  ;;  %v1394_v5 = vand.u32 4294901760, %v185_v2  ;;  %v184_v6 = vld [vmem:[%s1695_s1 + $0x10] sm:$0xff]  ;;  %v183_v7 = vld [vmem:[%s1695_s1 + $0x8] sm:$0xff]  ;;  %v182_v8 = vld [vmem:[%s1695_s1] sm:$0xff] }
   0xd   : > { %v1405_v9 = vand.u32 4294901760, %v184_v6  ;;  %v1407_v10 = vand.u32 4294901760, %v183_v7  ;;  %v1409_v11 = vand.u32 4294901760, %v182_v8  ;;  %s1103_s27 = sshll.u32 %s1699_s20, 3 }
   0xe   : > { %1193 = vmatprep.subr.mxu0 %v1390_v3  ;;  %v1413_v12 = vsub.f32 %v187_v0, %v1390_v3  ;;  %v1416_v13 = vsub.f32 %v186_v1, %v1392_v4  ;;  %v1419_v14 = vsub.f32 %v185_v2, %v1394_v5  ;;  %s1466_s30 = scalar_lea.vmem %s1694_s0, %s1103_s27  ;;  %s1673_s8 = scalar_lea.vmem %s1697_s3, %s1103_s27 }
   0xf   : > { %1194 = vmatpush3.msra.mxu0 %v1390_v3  ;;  %v1423_v15 = vsub.f32 %v184_v6, %v1405_v9  ;;  %v1428_v16 = vsub.f32 %v183_v7, %v1407_v10  ;;  %v1431_v17 = vsub.f32 %v182_v8, %v1409_v11  ;;  %v174_v28 = vld [vmem:[%s1466_s30] sm:$0xff]  ;;  %v175_v30 = vld [vmem:[%s1466_s30 + $0x8] sm:$0xff]  ;;  %v176_v32 = vld [vmem:[%s1466_s30 + $0x10] sm:$0xff] }
  0x10   : > { %1195 = vmatprep.subr.mxu0 %v1392_v4  ;;  %v1435_v18 = vand.u32 4294901760, %v1413_v12  ;;  %v1438_v19 = vand.u32 4294901760, %v1416_v13  ;;  %v1441_v20 = vand.u32 4294901760, %v1419_v14  ;;  %v197_v36 = vsel %vm195_vm0, %v174_v28, 0  ;;  %v177_v37 = vld [vmem:[%s1466_s30 + $0x18] sm:$0xff]  ;;  %v178_v38 = vld [vmem:[%s1466_s30 + $0x20] sm:$0xff] }
  0x11   : > { %1196 = vmatpush3.msra.mxu0 %v1392_v4  ;;  %v1445_v21 = vand.u32 4294901760, %v1423_v15  ;;  %v1449_v22 = vand.u32 4294901760, %v1428_v16  ;;  %v1452_v23 = vand.u32 4294901760, %v1431_v17  ;;  %v1483_v40 = vand.u32 4294901760, %v197_v36  ;;  %v179_v43 = vld [vmem:[%s1466_s30 + $0x28] sm:$0xff]  ;;  %v180_v44 = vld [vmem:[%s1466_s30 + $0x30] sm:$0xff] }
  0x12   : > { %v395_v24 = vsub.f32 %v1413_v12, %v1435_v18  ;;  %1197 = vmatprep.subr.mxu0 %v1394_v5  ;;  %v402_v25 = vsub.f32 %v1416_v13, %v1438_v19  ;;  %v409_v26 = vsub.f32 %v1419_v14, %v1441_v20  ;;  %v200_v42 = vsel %vm195_vm0, %v175_v30, 0  ;;  %v181_v53 = vld [vmem:[%s1466_s30 + $0x38] sm:$0xff] }
  0x13   : > { %1198 = vmatpush3.msra.mxu0 %v1394_v5  ;;  %v416_v27 = vsub.f32 %v1423_v15, %v1445_v21  ;;  %v423_v29 = vsub.f32 %v1428_v16, %v1449_v22  ;;  %v430_v31 = vsub.f32 %v1431_v17, %v1452_v23  ;;  %v1489_v45 = vand.u32 4294901760, %v200_v42  ;;  %1229 = vmatprep.mubr.f32.mxu1 %v1483_v40 }
  0x14   : > { %v396_v33 = vand.u32 4294901760, %v395_v24  ;;  %v403_v34 = vand.u32 4294901760, %v402_v25  ;;  %1199 = vmatprep.subr.mxu0 %v1405_v9  ;;  %v410_v35 = vand.u32 4294901760, %v409_v26  ;;  %v203_v47 = vsel %vm195_vm0, %v176_v32, 0 }
  0x15   : > { %1200 = vmatpush3.msra.mxu0 %v1405_v9  ;;  %v417_v39 = vand.u32 4294901760, %v416_v27  ;;  %v424_v41 = vand.u32 4294901760, %v423_v29  ;;  %v431_v46 = vand.u32 4294901760, %v430_v31  ;;  %v206_v48 = vsel %vm195_vm0, %v177_v37, 0 }
  0x16   : > { %1217 = vmatprep.subr.mxu1 %v396_v33  ;;  %1201 = vmatprep.subr.mxu0 %v1407_v10  ;;  %v1495_v49 = vsub.f32 %v197_v36, %v1483_v40  ;;  %v1497_v50 = vand.u32 4294901760, %v203_v47  ;;  %v1499_v51 = vand.u32 4294901760, %v206_v48  ;;  %v209_v52 = vsel %vm195_vm0, %v178_v38, 0 }
  0x17   : > { %1218 = vmatpush3.msra.mxu1 %v396_v33  ;;  %1202 = vmatpush3.msra.mxu0 %v1407_v10  ;;  %v1505_v54 = vsub.f32 %v200_v42, %v1489_v45  ;;  %v1507_v55 = vand.u32 4294901760, %v209_v52  ;;  %v212_v56 = vsel %vm195_vm0, %v179_v43, 0  ;;  %v215_v57 = vsel %vm195_vm0, %v180_v44, 0 }
  0x18   : > { %1219 = vmatprep.subr.mxu1 %v403_v34  ;;  %1203 = vmatprep.subr.mxu0 %v1409_v11  ;;  %v293_v58 = vand.u32 4294901760, %v1495_v49  ;;  %v1514_v59 = vsub.f32 %v203_v47, %v1497_v50  ;;  %v1517_v60 = vsub.f32 %v206_v48, %v1499_v51  ;;  %v1519_v61 = vand.u32 4294901760, %v212_v56 }
  0x19   : > { %1220 = vmatpush3.msra.mxu1 %v403_v34  ;;  %1204 = vmatpush3.msra.mxu0 %v1409_v11  ;;  %v303_v62 = vand.u32 4294901760, %v1505_v54  ;;  %v1524_v63 = vsub.f32 %v209_v52, %v1507_v55  ;;  %v1526_v0 = vand.u32 4294901760, %v215_v57  ;;  %v218_v1 = vsel %vm195_vm0, %v181_v53, 0 }
  0x1a   : > { %1221 = vmatprep.subr.mxu1 %v410_v35  ;;  %1241 = vmatprep.subr.mxu0 %v1413_v12  ;;  %v294_v2 = vsub.f32 %v1495_v49, %v293_v58  ;;  %v313_v6 = vand.u32 4294901760, %v1514_v59  ;;  %v323_v7 = vand.u32 4294901760, %v1517_v60  ;;  %v1536_v8 = vsub.f32 %v212_v56, %v1519_v61 }
  0x1b   : > { %1222 = vmatpush3.msra.mxu1 %v410_v35  ;;  %v304_v24 = vsub.f32 %v1505_v54, %v303_v62  ;;  %v333_v25 = vand.u32 4294901760, %v1524_v63  ;;  %v1543_v26 = vsub.f32 %v215_v57, %v1526_v0  ;;  %v1545_v27 = vand.u32 4294901760, %v218_v1 }
  0x1c   : > { %1223 = vmatprep.subr.mxu1 %v417_v39  ;;  %v295_v28 = vand.u32 4294901760, %v294_v2  ;;  %v314_v29 = vsub.f32 %v1514_v59, %v313_v6  ;;  %v324_v30 = vsub.f32 %v1517_v60, %v323_v7  ;;  %v343_v31 = vand.u32 4294901760, %v1536_v8 }
  0x1d   : > { %1224 = vmatpush3.msra.mxu1 %v417_v39  ;;  %v305_v32 = vand.u32 4294901760, %v304_v24  ;;  %v334_v33 = vsub.f32 %v1524_v63, %v333_v25  ;;  %v1558_v34 = vsub.f32 %v218_v1, %v1545_v27  ;;  %v353_v38 = vand.u32 4294901760, %v1543_v26 }
  0x1e   : > { %1225 = vmatprep.subr.mxu1 %v424_v41  ;;  %1205 = vmatprep.mubr.f32.mxu0 %v295_v28  ;;  %v315_v35 = vand.u32 4294901760, %v314_v29  ;;  %v325_v36 = vand.u32 4294901760, %v324_v30  ;;  %v344_v37 = vsub.f32 %v1536_v8, %v343_v31 }
  0x1f   : > { %1226 = vmatpush3.msra.mxu1 %v424_v41  ;;  %1206 = vmatmul.mubr.f32.vlgmr.msra.gmra.mxu0 %v305_v32  ;;  %v363_v39 = vand.u32 4294901760, %v1558_v34  ;;  %v335_v42 = vand.u32 4294901760, %v334_v33  ;;  %v354_v43 = vsub.f32 %v1543_v26, %v353_v38 }
  0x20   : > { %1227 = vmatprep.subr.mxu1 %v431_v46  ;;  %1242 = vmatpush3.msra.mxu0 %v1413_v12  ;;  %v345_v41 = vand.u32 4294901760, %v344_v37 }
  0x21   : > { %1228 = vmatpush3.msra.mxu1 %v431_v46  ;;  %1208 = vmatprep.mubr.f32.mxu0 %v315_v35  ;;  %v364_v12 = vsub.f32 %v1558_v34, %v363_v39  ;;  %v355_v44 = vand.u32 4294901760, %v354_v43 }
  0x22   : > { %1230 = vmatmul.mubr.f32.vlgmr.msra.gmra.mxu1 %v1489_v45  ;;  %1265 = vmatprep.subr.mxu1 %v1390_v3 }
  0x23   : > { %1243 = vmatprep.subr.mxu0 %v1416_v13  ;;  %1209 = vmatmul.mubr.f32.gmra.mxu0 %v325_v36 }
  0x24   : > { %1266 = vmatpush3.msra.mxu1 %v1390_v3  ;;  %1244 = vmatpush3.msra.mxu0 %v1416_v13  ;;  %v365_v13 = vand.u32 4294901760, %v364_v12 }
  0x25   : > { %1232 = vmatprep.mubr.f32.mxu1 %v1497_v50  ;;  %1267 = vmatprep.subr.mxu1 %v1392_v4 }
  0x26   : > { %1211 = vmatprep.mubr.f32.mxu0 %v335_v42  ;;  %1233 = vmatmul.mubr.f32.gmra.mxu1 %v1499_v51 }
  0x27   : > { %1245 = vmatprep.subr.mxu0 %v1419_v14  ;;  %1268 = vmatpush3.msra.mxu1 %v1392_v4 }
  0x28   : > { %1212 = vmatmul.mubr.f32.gmra.mxu0 %v345_v41  ;;  %1269 = vmatprep.subr.mxu1 %v1394_v5 }
  0x29   : > { %1246 = vmatpush3.msra.mxu0 %v1419_v14  ;;  %1235 = vmatprep.mubr.f32.mxu1 %v1507_v55 }
  0x2a   : > { %1247 = vmatprep.subr.mxu0 %v1423_v15  ;;  %1270 = vmatpush3.msra.mxu1 %v1394_v5 }
  0x2b   : > { %1248 = vmatpush3.msra.mxu0 %v1423_v15  ;;  %1214 = vmatprep.mubr.f32.mxu0 %v355_v44 }
  0x2c   : > { %1236 = vmatmul.mubr.f32.gmra.mxu1 %v1519_v61  ;;  %1271 = vmatprep.subr.mxu1 %v1405_v9 }
  0x2d   : > { %1215 = vmatmul.mubr.f32.gmra.mxu0 %v365_v13  ;;  %1249 = vmatprep.subr.mxu0 %v1428_v16 }
  0x2e   : > { %1272 = vmatpush3.msra.mxu1 %v1405_v9  ;;  %1250 = vmatpush3.msra.mxu0 %v1428_v16 }
  0x2f   : > { %1238 = vmatprep.mubr.f32.mxu1 %v1526_v0  ;;  %1251 = vmatprep.subr.mxu0 %v1431_v17 }
  0x30   : > { %1273 = vmatprep.subr.mxu1 %v1407_v10  ;;  %1239 = vmatmul.mubr.f32.gmra.mxu1 %v1545_v27 }
  0x31   : > { %1252 = vmatpush3.msra.mxu0 %v1431_v17  ;;  %1253 = vmatprep.mubr.f32.mxu0 %v1495_v49  ;;  %v1106_v49 = vld [vmem:[%s1696_s2] ss:$0 sm:$0xff] }
  0x32   : > { %1274 = vmatpush3.msra.mxu1 %v1407_v10  ;;  %1254 = vmatmul.mubr.f32.vlgmr.msra.gmra.mxu0 %v1505_v54 }
  0x33   : > { %1275 = vmatprep.subr.mxu1 %v1409_v11  ;;  %1289 = vmatprep.subr.mxu0 %v1435_v18 }
  0x34   : > { %1276 = vmatpush3.msra.mxu1 %v1409_v11  ;;  %1277 = vmatprep.mubr.f32.mxu1 %v293_v58 }
  0x35   : > { %1290 = vmatpush3.msra.mxu0 %v1435_v18  ;;  %1256 = vmatprep.mubr.f32.mxu0 %v1514_v59 }
  0x36   : > { %1278 = vmatmul.mubr.f32.vlgmr.msra.gmra.mxu1 %v303_v62  ;;  %1313 = vmatprep.subr.mxu1 %v1390_v3 }
  0x37   : > { %1257 = vmatmul.mubr.f32.gmra.mxu0 %v1517_v60  ;;  %1291 = vmatprep.subr.mxu0 %v1438_v19 }
  0x38   : > { %1314 = vmatpush3.msra.mxu1 %v1390_v3  ;;  %1292 = vmatpush3.msra.mxu0 %v1438_v19 }
  0x39   : > { %1280 = vmatprep.mubr.f32.mxu1 %v313_v6  ;;  %1315 = vmatprep.subr.mxu1 %v1392_v4 }
  0x3a   : > { %1259 = vmatprep.mubr.f32.mxu0 %v1524_v63  ;;  %1281 = vmatmul.mubr.f32.gmra.mxu1 %v323_v7 }
  0x3b   : > { %1293 = vmatprep.subr.mxu0 %v1441_v20  ;;  %1316 = vmatpush3.msra.mxu1 %v1392_v4 }
  0x3c   : > { %1260 = vmatmul.mubr.f32.gmra.mxu0 %v1536_v8  ;;  %1317 = vmatprep.subr.mxu1 %v1394_v5 }
  0x3d   : > { %1294 = vmatpush3.msra.mxu0 %v1441_v20  ;;  %1283 = vmatprep.mubr.f32.mxu1 %v333_v25 }
  0x3e   : > { %1295 = vmatprep.subr.mxu0 %v1445_v21  ;;  %1318 = vmatpush3.msra.mxu1 %v1394_v5 }
  0x3f   : > { %1296 = vmatpush3.msra.mxu0 %v1445_v21  ;;  %1262 = vmatprep.mubr.f32.mxu0 %v1543_v26 }
  0x40   : > { %1284 = vmatmul.mubr.f32.gmra.mxu1 %v343_v31  ;;  %1319 = vmatprep.subr.mxu1 %v1405_v9 }
  0x41   : > { %1263 = vmatmul.mubr.f32.gmra.mxu0 %v1558_v34  ;;  %1297 = vmatprep.subr.mxu0 %v1449_v22 }
  0x42   : > { %1320 = vmatpush3.msra.mxu1 %v1405_v9  ;;  %1298 = vmatpush3.msra.mxu0 %v1449_v22 }
  0x43   : > { %1286 = vmatprep.mubr.f32.mxu1 %v353_v38  ;;  %1299 = vmatprep.subr.mxu0 %v1452_v23 }
  0x44   : > { %1321 = vmatprep.subr.mxu1 %v1407_v10  ;;  %1287 = vmatmul.mubr.f32.gmra.mxu1 %v363_v39 }
  0x45   : > { %1300 = vmatpush3.msra.mxu0 %v1452_v23  ;;  %1301 = vmatprep.mubr.f32.mxu0 %v1483_v40 }
  0x46   : > { %1322 = vmatpush3.msra.mxu1 %v1407_v10  ;;  %1302 = vmatmul.mubr.f32.vlgmr.msra.gmra.mxu0 %v1489_v45 }
  0x47   : > { %1323 = vmatprep.subr.mxu1 %v1409_v11  ;;  %1325 = vmatprep.mubr.f32.mxu1 %v1483_v40 }
  0x48   : > { %1324 = vmatpush3.msra.mxu1 %v1409_v11  ;;  %1304 = vmatprep.mubr.f32.mxu0 %v1497_v50 }
  0x49   : > { %1326 = vmatmul.mubr.f32.vlgmr.msra.gmra.mxu1 %v1489_v45 }
  0x4a   : > { %1328 = vmatprep.mubr.f32.mxu1 %v1497_v50  ;;  %1305 = vmatmul.mubr.f32.gmra.mxu0 %v1499_v51 }
  0x4b   : > { %1307 = vmatprep.mubr.f32.mxu0 %v1507_v55 }
  0x4d   : > { %1329 = vmatmul.mubr.f32.gmra.mxu1 %v1499_v51 }
  0x4e   : > { %1331 = vmatprep.mubr.f32.mxu1 %v1507_v55  ;;  %1308 = vmatmul.mubr.f32.gmra.mxu0 %v1519_v61 }
  0x4f   : > { %1310 = vmatprep.mubr.f32.mxu0 %v1526_v0 }
  0x51   : > { %1332 = vmatmul.mubr.f32.gmra.mxu1 %v1519_v61 }
  0x52   : > { %1334 = vmatprep.mubr.f32.mxu1 %v1526_v0  ;;  %1311 = vmatmul.mubr.f32.gmra.mxu0 %v1545_v27 }
  0x55   : > { %1335 = vmatmul.mubr.f32.gmra.mxu1 %v1545_v27 }
  0xdf   : > { %v1207_v3 = vpop.f32.mrf.mxu0 }
  0xe0   : > { %v308_v52 = vadd.f32 %v1207_v3, %v1106_v49 }
  0xe1   : > { %v297_v4 = vpop.f32.mrf.mxu0 }
  0xe2   : > { %v1231_v5 = vpop.f32.mrf.mxu1  ;;  %v298_v55 = vadd.f32 %v1106_v49, %v297_v4 }
  0xe3   : > { %v1210_v9 = vpop.f32.mrf.mxu0  ;;  %v475_v57 = vadd.f32 %v1231_v5, %v308_v52 }
  0xe4   : > { %v468_v10 = vpop.f32.mrf.mxu1  ;;  %v328_v58 = vadd.f32 %v1210_v9, %v1106_v49 }
  0xe5   : > { %v317_v11 = vpop.f32.mrf.mxu0  ;;  %v469_v61 = vadd.f32 %v468_v10, %v298_v55 }
  0xe6   : > { %v1234_v14 = vpop.f32.mrf.mxu1  ;;  %v318_v62 = vadd.f32 %v1106_v49, %v317_v11 }
  0xe7   : > { %v487_v2 = vadd.f32 %v1234_v14, %v328_v58 }
  0xe8   : > { %v1213_v15 = vpop.f32.mrf.mxu0  ;;  %v480_v16 = vpop.f32.mrf.mxu1 }
  0xe9   : > { %v348_v6 = vadd.f32 %v1213_v15, %v1106_v49  ;;  %v481_v25 = vadd.f32 %v480_v16, %v318_v62 }
  0xea   : > { %v337_v17 = vpop.f32.mrf.mxu0 }
  0xeb   : > { %v338_v8 = vadd.f32 %v1106_v49, %v337_v17 }
  0xec   : > { %v1237_v18 = vpop.f32.mrf.mxu1 }
  0xed   : > { %v1216_v19 = vpop.f32.mrf.mxu0  ;;  %v499_v31 = vadd.f32 %v1237_v18, %v348_v6 }
  0xee   : > { %v492_v20 = vpop.f32.mrf.mxu1  ;;  %v368_v28 = vadd.f32 %v1216_v19, %v1106_v49 }
  0xef   : > { %v357_v21 = vpop.f32.mrf.mxu0  ;;  %v493_v35 = vadd.f32 %v492_v20, %v338_v8 }
  0xf0   : > { %v1240_v22 = vpop.f32.mrf.mxu1  ;;  %v358_v36 = vadd.f32 %v1106_v49, %v357_v21 }
  0xf1   : > { %v511_v12 = vadd.f32 %v1240_v22, %v368_v28 }
  0xf2   : > { %v1255_v23 = vpop.f32.mrf.mxu0  ;;  %v504_v40 = vpop.f32.mrf.mxu1 }
  0xf3   : > { %v602_v63 = vadd.f32 %v1255_v23, %v475_v57  ;;  %v505_v10 = vadd.f32 %v504_v40, %v358_v36 }
  0xf4   : > { %v594_v45 = vpop.f32.mrf.mxu0 }
  0xf5   : > { %v595_v7 = vadd.f32 %v594_v45, %v469_v61 }
  0xf6   : > { %v1279_v46 = vpop.f32.mrf.mxu1 }
  0xf7   : > { %v1258_v47 = vpop.f32.mrf.mxu0  ;;  %v731_v26 = vadd.f32 %v1279_v46, %v602_v63 }
  0xf8   : > { %v722_v48 = vpop.f32.mrf.mxu1  ;;  %v616_v27 = vadd.f32 %v1258_v47, %v487_v2 }
  0xf9   : > { %v608_v50 = vpop.f32.mrf.mxu0  ;;  %v723_v32 = vadd.f32 %v722_v48, %v595_v7 }
  0xfa   : > { %v1282_v51 = vpop.f32.mrf.mxu1  ;;  %v609_v33 = vadd.f32 %v608_v50, %v481_v25 }
  0xfb   : > { %v747_v39 = vadd.f32 %v1282_v51, %v616_v27 }
  0xfc   : > { %v1261_v53 = vpop.f32.mrf.mxu0  ;;  %v738_v54 = vpop.f32.mrf.mxu1 }
  0xfd   : > { %v630_v42 = vadd.f32 %v1261_v53, %v499_v31  ;;  %v739_v3 = vadd.f32 %v738_v54, %v609_v33 }
  0xfe   : > { %v622_v56 = vpop.f32.mrf.mxu0 }
  0xff   : > { %v623_v4 = vadd.f32 %v622_v56, %v493_v35 }
 0x100   : > { %v1285_v59 = vpop.f32.mrf.mxu1 }
 0x101   : > { %v1264_v60 = vpop.f32.mrf.mxu0  ;;  %v763_v15 = vadd.f32 %v1285_v59, %v630_v42 }
 0x102   : > { %v754_v0 = vpop.f32.mrf.mxu1  ;;  %v644_v16 = vadd.f32 %v1264_v60, %v511_v12 }
 0x103   : > { %v636_v1 = vpop.f32.mrf.mxu0  ;;  %v755_v21 = vadd.f32 %v754_v0, %v623_v4 }
 0x104   : > { %v1288_v24 = vpop.f32.mrf.mxu1  ;;  %v637_v22 = vadd.f32 %v636_v1, %v505_v10 }
 0x105   : > { %v779_v47 = vadd.f32 %v1288_v24, %v644_v16 }
 0x106   : > { %v1303_v29 = vpop.f32.mrf.mxu0  ;;  %v770_v30 = vpop.f32.mrf.mxu1 }
 0x107   : > { %v874_v34 = vadd.f32 %v1303_v29, %v731_v26  ;;  %v771_v52 = vadd.f32 %v770_v30, %v637_v22 }
 0x108   : > { %v867_v37 = vpop.f32.mrf.mxu0 }
 0x109   : > { %v1327_v38 = vpop.f32.mrf.mxu1  ;;  %v868_v41 = vadd.f32 %v867_v37, %v723_v32 }
 0x10a   : > { %v993_v43 = vadd.f32 %v1327_v38, %v874_v34  ;;  %v1306_v44 = vpop.f32.mrf.mxu0 }
 0x10b   : > { %v986_v13 = vpop.f32.mrf.mxu1  ;;  %v886_v5 = vadd.f32 %v1306_v44, %v747_v39 }
 0x10c   : > { %1034 = vst.msk [vmem:[%s1673_s8 + $0x8] sm:$0xff] %vm1032_vm1, %v993_v43  ;;  %v987_v9 = vadd.f32 %v986_v13, %v868_v41  ;;  %v879_v11 = vpop.f32.mrf.mxu0 }
 0x10d   : > { %v1330_v14 = vpop.f32.mrf.mxu1  ;;  %v880_v17 = vadd.f32 %v879_v11, %v739_v3 }
 0x10e   : > { %1033 = vst.msk [vmem:[%s1673_s8] sm:$0xff] %vm1032_vm1, %v987_v9  ;;  %v1005_v18 = vadd.f32 %v1330_v14, %v886_v5  ;;  %v1309_v19 = vpop.f32.mrf.mxu0 }
 0x10f   : > { %v998_v20 = vpop.f32.mrf.mxu1  ;;  %v898_v23 = vadd.f32 %v1309_v19, %v763_v15 }
 0x110   : > { %1036 = vst.msk [vmem:[%s1673_s8 + $0x18] sm:$0xff] %vm1032_vm1, %v1005_v18  ;;  %v999_v45 = vadd.f32 %v998_v20, %v880_v17  ;;  %v891_v40 = vpop.f32.mrf.mxu0 }
 0x111   : > { %v1333_v46 = vpop.f32.mrf.mxu1  ;;  %v892_v48 = vadd.f32 %v891_v40, %v755_v21 }
 0x112   : > { %1035 = vst.msk [vmem:[%s1673_s8 + $0x10] sm:$0xff] %vm1032_vm1, %v999_v45  ;;  %v1017_v49 = vadd.f32 %v1333_v46, %v898_v23  ;;  %v1312_v50 = vpop.f32.mrf.mxu0 }
 0x113   : > { %v1010_v51 = vpop.f32.mrf.mxu1  ;;  %v910_v53 = vadd.f32 %v1312_v50, %v779_v47 }
 0x114   : > { %1038 = vst.msk [vmem:[%s1673_s8 + $0x28] sm:$0xff] %vm1032_vm1, %v1017_v49  ;;  %v1011_v54 = vadd.f32 %v1010_v51, %v892_v48  ;;  %v903_v55 = vpop.f32.mrf.mxu0 }
 0x115   : > { %v1336_v56 = vpop.f32.mrf.mxu1  ;;  %v904_v57 = vadd.f32 %v903_v55, %v771_v52 }
 0x116   : > { %1037 = vst.msk [vmem:[%s1673_s8 + $0x20] sm:$0xff] %vm1032_vm1, %v1011_v54  ;;  %v1029_v58 = vadd.f32 %v1336_v56, %v910_v53 }
 0x117   : > { %v1022_v59 = vpop.f32.mrf.mxu1 }
 0x118   : > { %1040 = vst.msk [vmem:[%s1673_s8 + $0x38] sm:$0xff] %vm1032_vm1, %v1029_v58  ;;  %v1023_v60 = vadd.f32 %v1022_v59, %v904_v57 }
 0x11a   : > { %1039 = vst.msk [vmem:[%s1673_s8 + $0x30] sm:$0xff] %vm1032_vm1, %v1023_v60 }
 0x11b PF: > { %s13_s12 = sadd.s32 1, %s1351_s12  }
 0x11c   : > { %p10_p4 = scmp.ge.s32.totalorder %s13_s12, 4  }
 0x11e   :  { %12 = sbr.rel (!%p10_p4) target bundleno = 1 (0x1), region = 62 }

</bundles_post_ra>
